<compile_context>
chip_gen: v6e
topology: v6e:2x2x1
jax: 0.10.0
libtpu: 0.0.40
codegen_flags: <defaults>
</compile_context>

<pallas_src>
import math
import functools

import jax
import jax.numpy as jnp
from jax import lax
from jax.experimental import pallas as pl
from jax.experimental.pallas import tpu as pltpu


def _gated_attention_kernel(num_heads, x_ref, mem_ref, bias_ref, w_ref, b_ref,
                            hm_ref, out_ref):
    """One batch block per grid step.

    x_ref   : (Nb, Ld, D)    context encoding block            (cdt)
    mem_ref : (Nb, Lm, D)    query/memory encoding block       (cdt)
    bias_ref: (Nb, 1, H*Lm)  additive key-mask bias             (f32)
    w_ref   : (D, 5D)        [Wq | Wc_in | Wk | Wv | Wc_ctx]    (cdt, resident)
    b_ref   : (1, 4D)        [bq | bc | bk | bv]                (f32, resident)
    hm_ref  : (H*Lm, D)      block-diagonal head mask           (cdt, resident)
    out_ref : (Nb, Ld, D)                                       (f32)
    """
    Nb, Ld, D = x_ref.shape
    Lm = mem_ref.shape[1]
    H = num_heads
    Dh = D // H
    HLm = H * Lm
    Mx = Nb * Ld
    Mm = Nb * Lm
    inv_sqrt_dh = 1.0 / math.sqrt(Dh)
    cdt = w_ref.dtype                         # MXU operand dtype (bf16 or f32)

    w = w_ref[...]                            # resident packed weights
    wproj = w[:, :4 * D]                      # (D, 4D) one 128-lane projection slab
    wcc = w[:, 4 * D:]                        # (D, D)  Wc_ctx
    b = b_ref[...]                            # (1, 4D) f32
    hm = hm_ref[...]                          # (HLm, D) 0/1 mask (exact in bf16)

    # ---- single stacked projection: [x-rows ; mem-rows] @ [Wq|Wc_in|Wk|Wv] ---
    x2 = x_ref[...].reshape(Mx, D)            # leading-dim merges (layout-free)
    m2 = mem_ref[...].reshape(Mm, D)
    xm = jnp.concatenate([x2, m2], axis=0)                          # (Mx+Mm, D)
    proj = jnp.dot(xm, wproj, preferred_element_type=jnp.float32)   # (Mx+Mm, 4D) f32

    q2   = proj[:Mx, 0 * D:1 * D] + b[:, 0 * D:1 * D]               # x @ Wq   + bq
    xres = proj[:Mx, 1 * D:2 * D] + b[:, 1 * D:2 * D]               # x @ Wc_in + bc
    k2   = proj[Mx:, 2 * D:3 * D] + b[:, 2 * D:3 * D]               # m @ Wk   + bk
    v2   = proj[Mx:, 3 * D:4 * D] + b[:, 3 * D:4 * D]               # m @ Wv   + bv

    q3 = q2.reshape(Nb, Ld, D).astype(cdt)
    k3 = k2.reshape(Nb, Lm, D).astype(cdt)
    v3 = v2.reshape(Nb, Lm, D).astype(cdt)

    # ---- block-diagonal multi-head trick ------------------------------------
    # Tile K/V H times along the key axis (broadcast, not concat) and zero the
    # cross-head feature dims, so a single full-D contraction yields exact
    # per-head scores / contexts, with ctx already head-concatenated along D.
    kblk = jnp.broadcast_to(k3[:, None], (Nb, H, Lm, D)).reshape(Nb, HLm, D) * hm
    vblk = jnp.broadcast_to(v3[:, None], (Nb, H, Lm, D)).reshape(Nb, HLm, D) * hm

    s = jnp.einsum('nqd,nmd->nqm', q3, kblk,
                   preferred_element_type=jnp.float32) * inv_sqrt_dh
    s = s + bias_ref[...]                     # (Nb, 1, HLm) additive -1e30 key mask

    # ---- per-head softmax (segmented max / sum; no cross-head shared max) ---
    kidx = lax.broadcasted_iota(jnp.int32, (Nb, Ld, HLm), 2)
    sels = [(kidx >= h * Lm) & (kidx < (h + 1) * Lm) for h in range(H)]

    m_full = jnp.zeros_like(s)
    for h in range(H):
        m_h = jnp.max(jnp.where(sels[h], s, -jnp.inf), axis=-1, keepdims=True)
        m_full = jnp.where(sels[h], m_h, m_full)
    e = jnp.exp(s - m_full)                   # per-head max exp arg is 0 -> denom >= 1

    inv_full = jnp.zeros_like(s)
    for h in range(H):                        # H reciprocals/row instead of H*Lm
        d_h = jnp.sum(jnp.where(sels[h], e, 0.0), axis=-1, keepdims=True)
        inv_full = jnp.where(sels[h], pl.reciprocal(d_h, approx=True), inv_full)
    attn = (e * inv_full).astype(cdt)         # (Nb, Ld, HLm)

    # ---- context (heads already concatenated along D) + output Linear -------
    ctx = jnp.einsum('nqm,nmd->nqd', attn, vblk,
                     preferred_element_type=jnp.float32)            # (Nb, Ld, D)
    out = xres + jnp.dot(ctx.reshape(Mx, D).astype(cdt), wcc,
                         preferred_element_type=jnp.float32)        # (Mx, D) f32

    # ---- fused gate: sigmoid(x)*tanh(x) == (1 - t)/(1 + t^2), t = exp(-x) ----
    t = jnp.exp(-jnp.clip(out, -30.0, 30.0))
    gated = (1.0 - t) * pl.reciprocal(1.0 + t * t, approx=True)
    out_ref[...] = gated.reshape(Nb, Ld, D).astype(out_ref.dtype)

    # TODO(synk): return_fake branch (training-time uniform fake attention) and
    # dropout masking are training-only paths and are not implemented.


def _block_vmem_bytes(nb, Ld, Lm, D, H, cbytes):
    """Rough per-grid-step VMEM footprint (double-buffered I/O + live values)."""
    f32 = 4
    HLm = H * Lm
    Mx, Mm = nb * Ld, nb * Lm
    io = 2 * (cbytes * (Mx + Mm) * D + f32 * nb * HLm + f32 * Mx * D)
    resident = 2 * (cbytes * (5 * D * D + HLm * D) + f32 * 4 * D)
    live = (f32 * (Mx + Mm) * 4 * D                 # proj
            + 2 * cbytes * nb * HLm * D             # kblk, vblk
            + 4 * f32 * Mx * HLm                    # s, e, attn, masks
            + 3 * f32 * Mx * D)                     # ctx, xres, out
    return io + resident + live


def _pick_batch_block(N, Ld, Lm, D, H, cbytes, budget):
    """Largest divisor of N whose estimated footprint fits `budget`.

    On single-TC chips (v5e/v6e) the biggest fitting block is simply best
    (fewer ~0.35us grid steps, bigger MXU M).  The default budget keeps the
    block safe on v7x's 64 MiB VMEM too; if the resulting grid is > 1 on v7x,
    pass batch_block explicitly so the step count stays even (dual TC).
    """
    for bb in range(N, 0, -1):
        if N % bb == 0 and _block_vmem_bytes(bb, Ld, Lm, D, H, cbytes) <= budget:
            return bb
    return 1


def adapted_gated_attention(inp, memory, mask, params, num_heads, *,
                            batch_block=None, use_bf16_matmul=True,
                            vmem_block_budget=24 * 1024 * 1024):
    """inp: (N, Ld, D), memory: (N, Lm, D), mask: (N, Lm) with 1 = valid key."""
    N, Ld, D = inp.shape
    _, Lm, _ = memory.shape
    H = num_heads
    assert D % H == 0
    Dh = D // H
    HLm = H * Lm

    wq, bq, wk, bk, wv, bv, wc_in, wc_ctx, bc = params

    # Matmul-operand dtype.  bf16 operands are valid on every generation
    # (including v5e's MXU); all bias / softmax / gate math stays f32.
    cdt = jnp.bfloat16 if use_bf16_matmul else jnp.float32
    cbytes = jnp.dtype(cdt).itemsize

    # ---- wrapper-side packing & pre-casting (free XLA work) -----------------
    wpack = jnp.concatenate([wq, wc_in, wk, wv, wc_ctx], axis=1).astype(cdt)  # (D, 5D)
    bpack = jnp.concatenate([bq, bc, bk, bv], axis=1).astype(jnp.float32)     # (1, 4D)
    x_in = inp.astype(cdt)
    m_in = memory.astype(cdt)

    # Hoisted constants, resident in VMEM across the grid:
    # block-diagonal head mask: hm[j, d] = 1 iff key-row j and feature d are in
    # the same head.
    row_head = (jnp.arange(HLm, dtype=jnp.int32) // Lm)[:, None]
    col_head = (jnp.arange(D, dtype=jnp.int32) // Dh)[None, :]
    headmask = (row_head == col_head).astype(cdt)                             # (HLm, D)
    # additive key-mask bias, pre-tiled once per head: (N, 1, H*Lm)
    key_bias = jnp.tile((-1e30) * (1.0 - mask.astype(jnp.float32)),
                        (1, H)).reshape(N, 1, HLm)

    if batch_block is None:
        batch_block = _pick_batch_block(N, Ld, Lm, D, H, cbytes, vmem_block_budget)
    assert N % batch_block == 0, "batch_block must divide N"

    # ---- cost estimate -------------------------------------------------------
    Mx, Mm = N * Ld, N * Lm
    flops = 2 * ((Mx + Mm) * D * 4 * D        # stacked projection
                 + Mx * D * HLm               # scores
                 + Mx * HLm * D               # context
                 + Mx * D * D)                # ctx @ Wc_ctx
    transcendentals = Mx * HLm + Mx * H + 2 * Mx * D   # softmax exp + recips + gate
    bytes_accessed = (cbytes * (x_in.size + m_in.size + wpack.size + headmask.size)
                      + 4 * (key_bias.size + bpack.size + N * Ld * D))

    kernel = functools.partial(_gated_attention_kernel, H)
    const = lambda shape: pl.BlockSpec(shape, lambda b, _s=shape: (0,) * len(_s))

    return pl.pallas_call(
        kernel,
        out_shape=jax.ShapeDtypeStruct((N, Ld, D), jnp.float32),
        grid_spec=pltpu.PrefetchScalarGridSpec(
            num_scalar_prefetch=0,
            grid=(N // batch_block,),
            in_specs=[
                pl.BlockSpec((batch_block, Ld, D), lambda b: (b, 0, 0)),    # x
                pl.BlockSpec((batch_block, Lm, D), lambda b: (b, 0, 0)),    # memory
                pl.BlockSpec((batch_block, 1, HLm), lambda b: (b, 0, 0)),   # key bias
                # Resident constants.  At multi-step grids these would ideally
                # carry pipeline_mode=pl.Buffered(1) (no point double-buffering
                # constant-index blocks); moot at the default grid=(1,) here.
                const((D, 5 * D)),                                          # weights
                const((1, 4 * D)),                                          # biases
                const((HLm, D)),                                            # head mask
            ],
            out_specs=pl.BlockSpec((batch_block, Ld, D), lambda b: (b, 0, 0)),
        ),
        compiler_params=pltpu.CompilerParams(
            dimension_semantics=("parallel",),
            # 48 MiB is safely inside every generation's VMEM (v7x: 64 MiB/TC).
            vmem_limit_bytes=48 * 1024 * 1024),
        cost_estimate=pl.CostEstimate(
            flops=flops, transcendentals=transcendentals,
            bytes_accessed=bytes_accessed),
    )(x_in, m_in, key_bias, wpack, bpack, headmask)


def _reference(inp, memory, mask, params, num_heads):
    """Pure-JAX reference mirroring the PyTorch forward (eval mode)."""
    wq, bq, wk, bk, wv, bv, wc_in, wc_ctx, bc = params
    N, Ld, D = inp.shape
    Lm = memory.shape[1]
    Dh = D // num_heads

    def heads(x, L):
        return x.reshape(N, L, num_heads, Dh).transpose(0, 2, 1, 3)

    q = heads(inp @ wq + bq, Ld)
    k = heads(memory @ wk + bk, Lm)
    v = heads(memory @ wv + bv, Lm)
    scores = jnp.einsum('nhqd,nhkd->nhqk', q, k) / math.sqrt(Dh)
    scores = scores + (-1e30) * (1.0 - mask[:, None, None, :])
    attn = jax.nn.softmax(scores, axis=-1)
    ctx = jnp.einsum('nhqk,nhkd->nhqd', attn, v).transpose(0, 2, 1, 3).reshape(N, Ld, D)
    out = inp @ wc_in + ctx @ wc_ctx + bc
    return jax.nn.sigmoid(out) * jnp.tanh(out)


if __name__ == "__main__":
    # config: input_dim=32, num_attention_heads=4 -> head_size=8
    N, Ld, Lm, D, H = 2, 8, 8, 32, 4

    key = jax.random.PRNGKey(0)
    ks = jax.random.split(key, 12)

    inp = jax.random.normal(ks[0], (N, Ld, D), jnp.float32)
    memory = jax.random.normal(ks[1], (N, Lm, D), jnp.float32)
    # query mask: batch 0 fully valid, batch 1 has 5 valid positions
    mask = jnp.stack([jnp.ones((Lm,), jnp.float32),
                      (jnp.arange(Lm) < 5).astype(jnp.float32)], axis=0)

    scale = 0.1
    wq = scale * jax.random.normal(ks[2], (D, D), jnp.float32)
    bq = scale * jax.random.normal(ks[3], (1, D), jnp.float32)
    wk = scale * jax.random.normal(ks[4], (D, D), jnp.float32)
    bk = scale * jax.random.normal(ks[5], (1, D), jnp.float32)
    wv = scale * jax.random.normal(ks[6], (D, D), jnp.float32)
    bv = scale * jax.random.normal(ks[7], (1, D), jnp.float32)
    # concate: Linear(2D -> D), split along its input axis into two (D, D) halves
    wc_in = scale * jax.random.normal(ks[8], (D, D), jnp.float32)
    wc_ctx = scale * jax.random.normal(ks[9], (D, D), jnp.float32)
    bc = scale * jax.random.normal(ks[10], (1, D), jnp.float32)

    params = (wq, bq, wk, bk, wv, bv, wc_in, wc_ctx, bc)

    ref = _reference(inp, memory, mask, params, H)

    # f32 MXU path (tight check; approx EUP reciprocals in the softmax
    # denominator and the gate are the only intentional numeric deviations).
    out_f32 = jax.block_until_ready(
        adapted_gated_attention(inp, memory, mask, params, H,
                                use_bf16_matmul=False))
    assert out_f32.shape == (N, Ld, D)
    assert jnp.allclose(out_f32, ref, atol=5e-3, rtol=5e-3), "f32 path mismatch"

    # bf16-operand MXU path (perf path on all generations); looser tolerance
    # for bf16 rounding, still tight enough to catch any head-mixing bug.
    out_bf16 = jax.block_until_ready(
        adapted_gated_attention(inp, memory, mask, params, H,
                                use_bf16_matmul=True))
    assert jnp.allclose(out_bf16, ref, atol=3e-2, rtol=3e-2), "bf16 path mismatch"

    print("KERNEL_OK")
</pallas_src>

<mosaic_0001>
module attributes {stable_mosaic.version = 11 : i64} {
  func.func @_gated_attention_kernel(%arg0: i32, %arg1: memref<2x8x32xf32, #tpu.memory_space<vmem>>, %arg2: memref<2x8x32xf32, #tpu.memory_space<vmem>>, %arg3: memref<2x1x32xf32, #tpu.memory_space<vmem>>, %arg4: memref<32x160xf32, #tpu.memory_space<vmem>>, %arg5: memref<1x128xf32, #tpu.memory_space<vmem>>, %arg6: memref<32x32xf32, #tpu.memory_space<vmem>>, %arg7: memref<2x8x32xf32, #tpu.memory_space<vmem>>) attributes {dimension_semantics = [#tpu.dimension_semantics<parallel>], iteration_bounds = array<i64: 1>, scalar_prefetch = 0 : i64, scratch_operands = 0 : i64, tpu.core_type = #tpu.core_type<tc>, window_params = [{transform_indices = @transform_0, window_bounds = array<i64: 2, 8, 32>}, {transform_indices = @transform_1, window_bounds = array<i64: 2, 8, 32>}, {transform_indices = @transform_2, window_bounds = array<i64: 2, 1, 32>}, {pipeline_mode = #tpu.pipeline_mode<synchronous>, transform_indices = @transform_3, window_bounds = array<i64: 32, 160>}, {pipeline_mode = #tpu.pipeline_mode<synchronous>, transform_indices = @transform_4, window_bounds = array<i64: 1, 128>}, {pipeline_mode = #tpu.pipeline_mode<synchronous>, transform_indices = @transform_5, window_bounds = array<i64: 32, 32>}, {transform_indices = @transform_6, window_bounds = array<i64: 2, 8, 32>}]} {
    %c0 = arith.constant 0 : index
    %c0_0 = arith.constant 0 : index
    %0 = vector.load %arg4[%c0, %c0_0] : memref<32x160xf32, #tpu.memory_space<vmem>>, vector<32x160xf32>
    %1 = vector.extract_strided_slice %0 {offsets = [0, 0], sizes = [32, 128], strides = [1, 1]} : vector<32x160xf32> to vector<32x128xf32>
    %2 = vector.extract_strided_slice %0 {offsets = [0, 128], sizes = [32, 32], strides = [1, 1]} : vector<32x160xf32> to vector<32x32xf32>
    %c0_1 = arith.constant 0 : index
    %c0_2 = arith.constant 0 : index
    %3 = vector.load %arg5[%c0_1, %c0_2] : memref<1x128xf32, #tpu.memory_space<vmem>>, vector<1x128xf32>
    %c0_3 = arith.constant 0 : index
    %c0_4 = arith.constant 0 : index
    %4 = vector.load %arg6[%c0_3, %c0_4] : memref<32x32xf32, #tpu.memory_space<vmem>>, vector<32x32xf32>
    %c0_5 = arith.constant 0 : index
    %c0_6 = arith.constant 0 : index
    %c0_7 = arith.constant 0 : index
    %5 = vector.load %arg1[%c0_5, %c0_6, %c0_7] : memref<2x8x32xf32, #tpu.memory_space<vmem>>, vector<2x8x32xf32>
    %6 = vector.shape_cast %5 : vector<2x8x32xf32> to vector<16x32xf32>
    %c0_8 = arith.constant 0 : index
    %c0_9 = arith.constant 0 : index
    %c0_10 = arith.constant 0 : index
    %7 = vector.load %arg2[%c0_8, %c0_9, %c0_10] : memref<2x8x32xf32, #tpu.memory_space<vmem>>, vector<2x8x32xf32>
    %8 = vector.shape_cast %7 : vector<2x8x32xf32> to vector<16x32xf32>
    %9 = tpu.concatenate %6, %8 in 0 : vector<16x32xf32>, vector<16x32xf32> -> vector<32x32xf32>
    %cst = arith.constant dense<0.000000e+00> : vector<32x128xf32>
    %10 = tpu.matmul %9, %1, %cst {dimension_numbers = #tpu.dot_dimension_numbers<[1], [0], [0], [1], [0, 0, 1, 1], [], []>} : vector<32x32xf32>, vector<32x128xf32>, vector<32x128xf32> -> vector<32x128xf32>
    %11 = vector.extract_strided_slice %10 {offsets = [0, 0], sizes = [16, 32], strides = [1, 1]} : vector<32x128xf32> to vector<16x32xf32>
    %12 = vector.extract_strided_slice %3 {offsets = [0, 0], sizes = [1, 32], strides = [1, 1]} : vector<1x128xf32> to vector<1x32xf32>
    %13 = vector.broadcast %12 : vector<1x32xf32> to vector<16x32xf32>
    %14 = arith.addf %11, %13 : vector<16x32xf32>
    %15 = vector.extract_strided_slice %10 {offsets = [0, 32], sizes = [16, 32], strides = [1, 1]} : vector<32x128xf32> to vector<16x32xf32>
    %16 = vector.extract_strided_slice %3 {offsets = [0, 32], sizes = [1, 32], strides = [1, 1]} : vector<1x128xf32> to vector<1x32xf32>
    %17 = vector.broadcast %16 : vector<1x32xf32> to vector<16x32xf32>
    %18 = arith.addf %15, %17 : vector<16x32xf32>
    %19 = vector.extract_strided_slice %10 {offsets = [16, 64], sizes = [16, 32], strides = [1, 1]} : vector<32x128xf32> to vector<16x32xf32>
    %20 = vector.extract_strided_slice %3 {offsets = [0, 64], sizes = [1, 32], strides = [1, 1]} : vector<1x128xf32> to vector<1x32xf32>
    %21 = vector.broadcast %20 : vector<1x32xf32> to vector<16x32xf32>
    %22 = arith.addf %19, %21 : vector<16x32xf32>
    %23 = vector.extract_strided_slice %10 {offsets = [16, 96], sizes = [16, 32], strides = [1, 1]} : vector<32x128xf32> to vector<16x32xf32>
    %24 = vector.extract_strided_slice %3 {offsets = [0, 96], sizes = [1, 32], strides = [1, 1]} : vector<1x128xf32> to vector<1x32xf32>
    %25 = vector.broadcast %24 : vector<1x32xf32> to vector<16x32xf32>
    %26 = arith.addf %23, %25 : vector<16x32xf32>
    %27 = vector.shape_cast %14 : vector<16x32xf32> to vector<2x8x32xf32>
    %28 = vector.shape_cast %22 : vector<16x32xf32> to vector<2x8x32xf32>
    %29 = vector.shape_cast %26 : vector<16x32xf32> to vector<2x8x32xf32>
    %30 = vector.shape_cast %28 : vector<2x8x32xf32> to vector<2x1x8x32xf32>
    %31 = vector.shape_cast %30 : vector<2x1x8x32xf32> to vector<2x1x8x32xf32>
    %32 = vector.broadcast %31 : vector<2x1x8x32xf32> to vector<2x4x8x32xf32>
    %33 = vector.shape_cast %32 : vector<2x4x8x32xf32> to vector<2x32x32xf32>
    %34 = vector.shape_cast %4 : vector<32x32xf32> to vector<1x32x32xf32>
    %35 = vector.broadcast %34 : vector<1x32x32xf32> to vector<2x32x32xf32>
    %36 = arith.mulf %33, %35 : vector<2x32x32xf32>
    %37 = vector.shape_cast %29 : vector<2x8x32xf32> to vector<2x1x8x32xf32>
    %38 = vector.shape_cast %37 : vector<2x1x8x32xf32> to vector<2x1x8x32xf32>
    %39 = vector.broadcast %38 : vector<2x1x8x32xf32> to vector<2x4x8x32xf32>
    %40 = vector.shape_cast %39 : vector<2x4x8x32xf32> to vector<2x32x32xf32>
    %41 = vector.shape_cast %4 : vector<32x32xf32> to vector<1x32x32xf32>
    %42 = vector.broadcast %41 : vector<1x32x32xf32> to vector<2x32x32xf32>
    %43 = arith.mulf %40, %42 : vector<2x32x32xf32>
    "tpu.trace_start"() <{level = 10 : i32, message = "nqd,nmd->nqm"}> : () -> ()
    %cst_11 = arith.constant dense<0.000000e+00> : vector<2x8x32xf32>
    %44 = tpu.matmul %27, %36, %cst_11 {dimension_numbers = #tpu.dot_dimension_numbers<[2], [2], [1], [1], [0, 0, 0, 1, 1, 1], [0], [0]>} : vector<2x8x32xf32>, vector<2x32x32xf32>, vector<2x8x32xf32> -> vector<2x8x32xf32>
    "tpu.trace_stop"() : () -> ()
    %cst_12 = arith.constant 0.353553385 : f32
    %45 = vector.broadcast %cst_12 : f32 to vector<2x8x32xf32>
    %46 = arith.mulf %44, %45 : vector<2x8x32xf32>
    %c0_13 = arith.constant 0 : index
    %c0_14 = arith.constant 0 : index
    %c0_15 = arith.constant 0 : index
    %47 = vector.load %arg3[%c0_13, %c0_14, %c0_15] : memref<2x1x32xf32, #tpu.memory_space<vmem>>, vector<2x1x32xf32>
    %48 = vector.broadcast %47 : vector<2x1x32xf32> to vector<2x8x32xf32>
    %49 = arith.addf %46, %48 : vector<2x8x32xf32>
    %50 = tpu.iota {dimensions = array<i32: 2>} : vector<2x8x32xi32>
    %c0_i32 = arith.constant 0 : i32
    %51 = vector.broadcast %c0_i32 : i32 to vector<2x8x32xi32>
    %52 = arith.cmpi sge, %50, %51 : vector<2x8x32xi32>
    %c8_i32 = arith.constant 8 : i32
    %53 = vector.broadcast %c8_i32 : i32 to vector<2x8x32xi32>
    %54 = arith.cmpi slt, %50, %53 : vector<2x8x32xi32>
    %55 = arith.andi %52, %54 : vector<2x8x32xi1>
    %c8_i32_16 = arith.constant 8 : i32
    %56 = vector.broadcast %c8_i32_16 : i32 to vector<2x8x32xi32>
    %57 = arith.cmpi sge, %50, %56 : vector<2x8x32xi32>
    %c16_i32 = arith.constant 16 : i32
    %58 = vector.broadcast %c16_i32 : i32 to vector<2x8x32xi32>
    %59 = arith.cmpi slt, %50, %58 : vector<2x8x32xi32>
    %60 = arith.andi %57, %59 : vector<2x8x32xi1>
    %c16_i32_17 = arith.constant 16 : i32
    %61 = vector.broadcast %c16_i32_17 : i32 to vector<2x8x32xi32>
    %62 = arith.cmpi sge, %50, %61 : vector<2x8x32xi32>
    %c24_i32 = arith.constant 24 : i32
    %63 = vector.broadcast %c24_i32 : i32 to vector<2x8x32xi32>
    %64 = arith.cmpi slt, %50, %63 : vector<2x8x32xi32>
    %65 = arith.andi %62, %64 : vector<2x8x32xi1>
    %c24_i32_18 = arith.constant 24 : i32
    %66 = vector.broadcast %c24_i32_18 : i32 to vector<2x8x32xi32>
    %67 = arith.cmpi sge, %50, %66 : vector<2x8x32xi32>
    %c32_i32 = arith.constant 32 : i32
    %68 = vector.broadcast %c32_i32 : i32 to vector<2x8x32xi32>
    %69 = arith.cmpi slt, %50, %68 : vector<2x8x32xi32>
    %70 = arith.andi %67, %69 : vector<2x8x32xi1>
    %cst_19 = arith.constant 0.000000e+00 : f32
    %71 = vector.broadcast %cst_19 : f32 to vector<2x8x32xf32>
    %cst_20 = arith.constant 0xFF800000 : f32
    %72 = vector.broadcast %cst_20 : f32 to vector<2x8x32xf32>
    %73 = arith.select %55, %49, %72 : vector<2x8x32xi1>, vector<2x8x32xf32>
    %cst_21 = arith.constant dense<0xFF800000> : vector<2x8xf32>
    %74 = vector.multi_reduction <maximumf>, %73, %cst_21 [2] : vector<2x8x32xf32> to vector<2x8xf32>
    %75 = vector.shape_cast %74 : vector<2x8xf32> to vector<2x8x1xf32>
    %76 = vector.shape_cast %75 : vector<2x8x1xf32> to vector<2x8x1xf32>
    %77 = vector.broadcast %76 : vector<2x8x1xf32> to vector<2x8x32xf32>
    %78 = arith.select %55, %77, %71 : vector<2x8x32xi1>, vector<2x8x32xf32>
    %cst_22 = arith.constant 0xFF800000 : f32
    %79 = vector.broadcast %cst_22 : f32 to vector<2x8x32xf32>
    %80 = arith.select %60, %49, %79 : vector<2x8x32xi1>, vector<2x8x32xf32>
    %cst_23 = arith.constant dense<0xFF800000> : vector<2x8xf32>
    %81 = vector.multi_reduction <maximumf>, %80, %cst_23 [2] : vector<2x8x32xf32> to vector<2x8xf32>
    %82 = vector.shape_cast %81 : vector<2x8xf32> to vector<2x8x1xf32>
    %83 = vector.shape_cast %82 : vector<2x8x1xf32> to vector<2x8x1xf32>
    %84 = vector.broadcast %83 : vector<2x8x1xf32> to vector<2x8x32xf32>
    %85 = arith.select %60, %84, %78 : vector<2x8x32xi1>, vector<2x8x32xf32>
    %cst_24 = arith.constant 0xFF800000 : f32
    %86 = vector.broadcast %cst_24 : f32 to vector<2x8x32xf32>
    %87 = arith.select %65, %49, %86 : vector<2x8x32xi1>, vector<2x8x32xf32>
    %cst_25 = arith.constant dense<0xFF800000> : vector<2x8xf32>
    %88 = vector.multi_reduction <maximumf>, %87, %cst_25 [2] : vector<2x8x32xf32> to vector<2x8xf32>
    %89 = vector.shape_cast %88 : vector<2x8xf32> to vector<2x8x1xf32>
    %90 = vector.shape_cast %89 : vector<2x8x1xf32> to vector<2x8x1xf32>
    %91 = vector.broadcast %90 : vector<2x8x1xf32> to vector<2x8x32xf32>
    %92 = arith.select %65, %91, %85 : vector<2x8x32xi1>, vector<2x8x32xf32>
    %cst_26 = arith.constant 0xFF800000 : f32
    %93 = vector.broadcast %cst_26 : f32 to vector<2x8x32xf32>
    %94 = arith.select %70, %49, %93 : vector<2x8x32xi1>, vector<2x8x32xf32>
    %cst_27 = arith.constant dense<0xFF800000> : vector<2x8xf32>
    %95 = vector.multi_reduction <maximumf>, %94, %cst_27 [2] : vector<2x8x32xf32> to vector<2x8xf32>
    %96 = vector.shape_cast %95 : vector<2x8xf32> to vector<2x8x1xf32>
    %97 = vector.shape_cast %96 : vector<2x8x1xf32> to vector<2x8x1xf32>
    %98 = vector.broadcast %97 : vector<2x8x1xf32> to vector<2x8x32xf32>
    %99 = arith.select %70, %98, %92 : vector<2x8x32xi1>, vector<2x8x32xf32>
    %100 = arith.subf %49, %99 : vector<2x8x32xf32>
    %101 = math.exp %100 : vector<2x8x32xf32>
    %cst_28 = arith.constant 0.000000e+00 : f32
    %102 = vector.broadcast %cst_28 : f32 to vector<2x8x32xf32>
    %cst_29 = arith.constant 0.000000e+00 : f32
    %103 = vector.broadcast %cst_29 : f32 to vector<2x8x32xf32>
    %104 = arith.select %55, %101, %103 : vector<2x8x32xi1>, vector<2x8x32xf32>
    %cst_30 = arith.constant dense<0.000000e+00> : vector<2x8xf32>
    %105 = vector.multi_reduction <add>, %104, %cst_30 [2] : vector<2x8x32xf32> to vector<2x8xf32>
    %106 = vector.shape_cast %105 : vector<2x8xf32> to vector<2x8x1xf32>
    %107 = tpu.reciprocal %106 {approx = true} : vector<2x8x1xf32> -> vector<2x8x1xf32>
    %108 = vector.shape_cast %107 : vector<2x8x1xf32> to vector<2x8x1xf32>
    %109 = vector.broadcast %108 : vector<2x8x1xf32> to vector<2x8x32xf32>
    %110 = arith.select %55, %109, %102 : vector<2x8x32xi1>, vector<2x8x32xf32>
    %cst_31 = arith.constant 0.000000e+00 : f32
    %111 = vector.broadcast %cst_31 : f32 to vector<2x8x32xf32>
    %112 = arith.select %60, %101, %111 : vector<2x8x32xi1>, vector<2x8x32xf32>
    %cst_32 = arith.constant dense<0.000000e+00> : vector<2x8xf32>
    %113 = vector.multi_reduction <add>, %112, %cst_32 [2] : vector<2x8x32xf32> to vector<2x8xf32>
    %114 = vector.shape_cast %113 : vector<2x8xf32> to vector<2x8x1xf32>
    %115 = tpu.reciprocal %114 {approx = true} : vector<2x8x1xf32> -> vector<2x8x1xf32>
    %116 = vector.shape_cast %115 : vector<2x8x1xf32> to vector<2x8x1xf32>
    %117 = vector.broadcast %116 : vector<2x8x1xf32> to vector<2x8x32xf32>
    %118 = arith.select %60, %117, %110 : vector<2x8x32xi1>, vector<2x8x32xf32>
    %cst_33 = arith.constant 0.000000e+00 : f32
    %119 = vector.broadcast %cst_33 : f32 to vector<2x8x32xf32>
    %120 = arith.select %65, %101, %119 : vector<2x8x32xi1>, vector<2x8x32xf32>
    %cst_34 = arith.constant dense<0.000000e+00> : vector<2x8xf32>
    %121 = vector.multi_reduction <add>, %120, %cst_34 [2] : vector<2x8x32xf32> to vector<2x8xf32>
    %122 = vector.shape_cast %121 : vector<2x8xf32> to vector<2x8x1xf32>
    %123 = tpu.reciprocal %122 {approx = true} : vector<2x8x1xf32> -> vector<2x8x1xf32>
    %124 = vector.shape_cast %123 : vector<2x8x1xf32> to vector<2x8x1xf32>
    %125 = vector.broadcast %124 : vector<2x8x1xf32> to vector<2x8x32xf32>
    %126 = arith.select %65, %125, %118 : vector<2x8x32xi1>, vector<2x8x32xf32>
    %cst_35 = arith.constant 0.000000e+00 : f32
    %127 = vector.broadcast %cst_35 : f32 to vector<2x8x32xf32>
    %128 = arith.select %70, %101, %127 : vector<2x8x32xi1>, vector<2x8x32xf32>
    %cst_36 = arith.constant dense<0.000000e+00> : vector<2x8xf32>
    %129 = vector.multi_reduction <add>, %128, %cst_36 [2] : vector<2x8x32xf32> to vector<2x8xf32>
    %130 = vector.shape_cast %129 : vector<2x8xf32> to vector<2x8x1xf32>
    %131 = tpu.reciprocal %130 {approx = true} : vector<2x8x1xf32> -> vector<2x8x1xf32>
    %132 = vector.shape_cast %131 : vector<2x8x1xf32> to vector<2x8x1xf32>
    %133 = vector.broadcast %132 : vector<2x8x1xf32> to vector<2x8x32xf32>
    %134 = arith.select %70, %133, %126 : vector<2x8x32xi1>, vector<2x8x32xf32>
    %135 = arith.mulf %101, %134 : vector<2x8x32xf32>
    "tpu.trace_start"() <{level = 10 : i32, message = "nqm,nmd->nqd"}> : () -> ()
    %cst_37 = arith.constant dense<0.000000e+00> : vector<2x8x32xf32>
    %136 = tpu.matmul %135, %43, %cst_37 {dimension_numbers = #tpu.dot_dimension_numbers<[2], [1], [1], [2], [0, 0, 0, 1, 1, 2], [0], [0]>} : vector<2x8x32xf32>, vector<2x32x32xf32>, vector<2x8x32xf32> -> vector<2x8x32xf32>
    "tpu.trace_stop"() : () -> ()
    %137 = vector.shape_cast %136 : vector<2x8x32xf32> to vector<16x32xf32>
    %cst_38 = arith.constant dense<0.000000e+00> : vector<16x32xf32>
    %138 = tpu.matmul %137, %2, %cst_38 {dimension_numbers = #tpu.dot_dimension_numbers<[1], [0], [0], [1], [0, 0, 1, 1], [], []>} : vector<16x32xf32>, vector<32x32xf32>, vector<16x32xf32> -> vector<16x32xf32>
    %139 = arith.addf %18, %138 : vector<16x32xf32>
    %cst_39 = arith.constant -3.000000e+01 : f32
    %cst_40 = arith.constant 3.000000e+01 : f32
    %140 = vector.broadcast %cst_39 : f32 to vector<16x32xf32>
    %141 = arith.maximumf %140, %139 : vector<16x32xf32>
    %142 = vector.broadcast %cst_40 : f32 to vector<16x32xf32>
    %143 = arith.minimumf %142, %141 : vector<16x32xf32>
    %cst_41 = arith.constant 0.000000e+00 : f32
    %144 = vector.broadcast %cst_41 : f32 to vector<16x32xf32>
    %145 = arith.subf %144, %143 : vector<16x32xf32>
    %146 = math.exp %145 : vector<16x32xf32>
    %cst_42 = arith.constant 1.000000e+00 : f32
    %147 = vector.broadcast %cst_42 : f32 to vector<16x32xf32>
    %148 = arith.subf %147, %146 : vector<16x32xf32>
    %149 = arith.mulf %146, %146 : vector<16x32xf32>
    %cst_43 = arith.constant 1.000000e+00 : f32
    %150 = vector.broadcast %cst_43 : f32 to vector<16x32xf32>
    %151 = arith.addf %150, %149 : vector<16x32xf32>
    %152 = tpu.reciprocal %151 {approx = true} : vector<16x32xf32> -> vector<16x32xf32>
    %153 = arith.mulf %148, %152 : vector<16x32xf32>
    %154 = vector.shape_cast %153 : vector<16x32xf32> to vector<2x8x32xf32>
    %c0_44 = arith.constant 0 : index
    %c0_45 = arith.constant 0 : index
    %c0_46 = arith.constant 0 : index
    %155 = vector.load %arg7[%c0_44, %c0_45, %c0_46] : memref<2x8x32xf32, #tpu.memory_space<vmem>>, vector<2x8x32xf32>
    tpu.vector_store %arg7[%c0_44, %c0_45, %c0_46], %154 {strides = array<i32>} : memref<2x8x32xf32, #tpu.memory_space<vmem>>, vector<2x8x32xf32>,
    return
  }
  func.func @transform_0(%arg0: i32) -> (i32, i32, i32) {
    %c0_i32 = arith.constant 0 : i32
    %c0_i32_0 = arith.constant 0 : i32
    %c0_i32_1 = arith.constant 0 : i32
    return %arg0, %c0_i32, %c0_i32_0 : i32, i32, i32
  }
  func.func @transform_1(%arg0: i32) -> (i32, i32, i32) {
    %c0_i32 = arith.constant 0 : i32
    %c0_i32_0 = arith.constant 0 : i32
    %c0_i32_1 = arith.constant 0 : i32
    return %arg0, %c0_i32, %c0_i32_0 : i32, i32, i32
  }
  func.func @transform_2(%arg0: i32) -> (i32, i32, i32) {
    %c0_i32 = arith.constant 0 : i32
    %c0_i32_0 = arith.constant 0 : i32
    %c0_i32_1 = arith.constant 0 : i32
    return %arg0, %c0_i32, %c0_i32_0 : i32, i32, i32
  }
  func.func @transform_3(%arg0: i32) -> (i32, i32) {
    %c0_i32 = arith.constant 0 : i32
    %c0_i32_0 = arith.constant 0 : i32
    %c0_i32_1 = arith.constant 0 : i32
    return %c0_i32, %c0_i32_0 : i32, i32
  }
  func.func @transform_4(%arg0: i32) -> (i32, i32) {
    %c0_i32 = arith.constant 0 : i32
    %c0_i32_0 = arith.constant 0 : i32
    %c0_i32_1 = arith.constant 0 : i32
    return %c0_i32, %c0_i32_0 : i32, i32
  }
  func.func @transform_5(%arg0: i32) -> (i32, i32) {
    %c0_i32 = arith.constant 0 : i32
    %c0_i32_0 = arith.constant 0 : i32
    %c0_i32_1 = arith.constant 0 : i32
    return %c0_i32, %c0_i32_0 : i32, i32
  }
  func.func @transform_6(%arg0: i32) -> (i32, i32, i32) {
    %c0_i32 = arith.constant 0 : i32
    %c0_i32_0 = arith.constant 0 : i32
    %c0_i32_1 = arith.constant 0 : i32
    return %arg0, %c0_i32, %c0_i32_0 : i32, i32, i32
  }
}

</mosaic_0001>

<bundles_post_ra>
// kernel: tpu_custom_call.1
= control target key start
LH: loop header
LB: loop body
LE: loop exit
PB: predicated region body
PF: predicated region fallthrough
CT: control target
= control target key end

     0   :  { %11 = vsyncpa [#allocation3], 0  ;;  %s1479_s0 = inlined_call_operand.hbm [shape: f32[2,8,32], index: 0, kind: input, shape index: {}]   ;;  %s1480_s1 = inlined_call_operand.hbm [shape: f32[2,8,32], index: 1, kind: input, shape index: {}]   ;;  %s1481_s2 = inlined_call_operand.vmem [shape: f32[2,1,32], index: 2, kind: input, shape index: {}]   ;;  %s1482_s3 = inlined_call_operand.hbm [shape: f32[32,160], index: 3, kind: input, shape index: {}]   ;;  %s1483_s4 = inlined_call_operand.vmem [shape: f32[1,128], index: 4, kind: input, shape index: {}]   ;;  %s1484_s5 = inlined_call_operand.hbm [shape: f32[32,32], index: 5, kind: input, shape index: {}]   ;;  %s1485_s6 = inlined_call_operand.hbm [shape: f32[2,8,32], index: 6, kind: output, shape index: {}]  }
   0x1   :  { %12 = vsyncpa [#allocation6], 0 }
   0x2   :  { %13 = vsyncpa [#allocation9], 0 }
   0x3   :  { %14 = vsyncpa [#allocation4], 0  ;;  %s1156_s21 = smov [#allocation5]   ;;  %s1157_s23 = smov [#allocation2]  }
   0x4   :  { %s32_s22 = sshll.u32 %s1156_s21, 4  ;;  %s20_s24 = sshll.u32 %s1157_s23, 4  ;;  %s33_s22 = int_to_ptr.vmem [resolvable:$true] %s32_s22  ;;  %s21_s24 = int_to_ptr.vmem [resolvable:$true] %s20_s24 }
   0x5   :  { %s1056_s25 = scalar_lea.vmem %s33_s22, 256  ;;  %p1061_p1 = scmp.lt.s32.totalorder %s33_s22, %s33_s22 }
   0x6   :  { %p1057_p0 = scmp.ne.s32.totalorder %s33_s22, %s1056_s25  ;;  %p1062_p2 = scmp.lt.s32.totalorder %s1056_s25, %s1056_s25 }
   0x8   :  { %p1063_p3 = por %p1062_p2, %p1061_p1 }
   0xa   :  { %p1064_p4 = pnand %p1063_p3, %p1057_p0 }
   0xc   :  { %1067 = shalt.err (!%p1064_p4)
}
   0xd   :  { %s1158_s26 = smov 128   ;;  %s1159_s27 = smov 8  }
   0xe   :  { %38 = dma.hbm_to_vmem [thread:$0]  %s1480_s1, 256, %s33_s22, [#allocation6], %s1158_s26, %s1158_s26, %s1159_s27  }
   0xf   :  { %s1076_s30 = scalar_lea.vmem %s21_s24, 256  ;;  %p1081_p6 = scmp.lt.s32.totalorder %s21_s24, %s21_s24 }
  0x10   :  { %p1077_p5 = scmp.ne.s32.totalorder %s21_s24, %s1076_s30  ;;  %p1082_p7 = scmp.lt.s32.totalorder %s1076_s30, %s1076_s30 }
  0x12   :  { %p1083_p8 = por %p1082_p7, %p1081_p6 }
  0x14   :  { %p1084_p9 = pnand %p1083_p8, %p1077_p5 }
  0x16   :  { %1087 = shalt.err (!%p1084_p9)
}
  0x17   :  { %26 = dma.hbm_to_vmem [thread:$0]  %s1479_s0, 256, %s21_s24, [#allocation3], %s1158_s26, %s1158_s26, %s1159_s27  }
  0x18   :  { %s1160_s9 = smov [#allocation7]  }
  0x19   :  { %s46_s10 = sshll.u32 %s1160_s9, 4  ;;  %s47_s10 = int_to_ptr.vmem [resolvable:$true] %s46_s10 }
  0x1a   :  { %s1096_s11 = scalar_lea.vmem %s47_s10, 1024  ;;  %p1101_p11 = scmp.lt.s32.totalorder %s47_s10, %s47_s10 }
  0x1b   :  { %p1097_p10 = scmp.ne.s32.totalorder %s47_s10, %s1096_s11  ;;  %p1102_p12 = scmp.lt.s32.totalorder %s1096_s11, %s1096_s11 }
  0x1d   :  { %p1103_p13 = por %p1102_p12, %p1101_p11 }
  0x1f   :  { %p1104_p0 = pnand %p1103_p13, %p1097_p10 }
  0x21   :  { %1107 = shalt.err (!%p1104_p0)
}
  0x22   :  { %s1161_s1 = smov 256   ;;  %s1162_s12 = smov 16  }
  0x23   :  { %52 = dma.hbm_to_vmem [thread:$0]  %s1482_s3, 1024, %s47_s10, [#allocation6], %s1161_s1, %s1161_s1, %s1162_s12  }
  0x24   :  { %s1163_s15 = smov [#allocation8]  }
  0x25   :  { %s60_s16 = sshll.u32 %s1163_s15, 4  ;;  %s61_s16 = int_to_ptr.vmem [resolvable:$true] %s60_s16 }
  0x26   :  { %s1116_s0 = scalar_lea.vmem %s61_s16, 512  ;;  %p1121_p2 = scmp.lt.s32.totalorder %s61_s16, %s61_s16 }
  0x27   :  { %p1117_p1 = scmp.ne.s32.totalorder %s61_s16, %s1116_s0  ;;  %p1122_p3 = scmp.lt.s32.totalorder %s1116_s0, %s1116_s0 }
  0x29   :  { %p1123_p4 = por %p1122_p3, %p1121_p2 }
  0x2b   :  { %p1124_p5 = pnand %p1123_p4, %p1117_p1 }
  0x2d   :  { %1127 = shalt.err (!%p1124_p5)
}
  0x2e   :  { %66 = dma.hbm_to_vmem [thread:$0]  %s1484_s5, 512, %s61_s16, [#allocation9], %s1158_s26, %s1158_s26, %s1159_s27  }
  0x2f   :  { %1148 = dma.done.wait [#allocation3], 256  }
  0x30   :  { %1149 = vsyncadd [#allocation3], 4294967040 }
  0x31   :  { %1150 = dma.done.wait [#allocation6], 1280  }
  0x32   :  { %1151 = vsyncadd [#allocation6], 4294966016 }
  0x33   :  { %1152 = dma.done.wait [#allocation9], 512  }
  0x34   :  { %1153 = vsyncadd [#allocation9], 4294966784  ;;  %vm96_vm0 = vcmask 261120   ;;  %v85_v0 = vld [vmem:[#allocation7 + $0x30] sm:$0xff]  ;;  %v83_v1 = vld [vmem:[#allocation7 + $0x20] sm:$0xff]  ;;  %s1164_s3 = smov 64   ;;  %v452_v42 = vlaneseq }
  0x35   :  { %937 = vmatprep.subr.mxu0 %v85_v0  ;;  %v92_v2 = vld [vmem:[#allocation2] sm:$0xff]  ;;  %v81_v3 = vld [vmem:[#allocation7 + $0x10] sm:$0xff]  ;;  %v1227_v4 = vld [vmem:[#allocation8 + $0x18] sm:$0xff]  ;;  %v1165_v12 = vmov 0.0   ;;  %vm1166_vm1 = vmmov 0   ;;  %s1168_s23 = smov 32  }
  0x36   :  { %938 = vmatpush3.msra.mxu0 %v85_v0  ;;  %945 = vmatprep.mubr.msk.f32.mxu0 %vm96_vm0, %v92_v2  ;;  %v1231_v5 = vld [vmem:[#allocation8 + $0x8] sm:$0xff]  ;;  %v79_v6 = vld [vmem:[#allocation7] sm:$0xff]  ;;  %v1235_v7 = vld [vmem:[#allocation8 + $0x10] sm:$0xff]  ;;  %v1303_v43 = vand.u32 127, %v452_v42  ;;  %s1169_s24 = smov [#allocation10]  }
  0x37   :  { %939 = vmatprep.subr.mxu0 %v83_v1  ;;  %214 = vrot.lane.b32.xlu0 %v1227_v4, %s1164_s3  ;;  %v1237_v8 = vld [vmem:[#allocation8] sm:$0xff]  ;;  %v93_v9 = vld [vmem:[#allocation2 + $0x8] sm:$0xff]  ;;  %v94_v10 = vld [vmem:[#allocation5] sm:$0xff]  ;;  %s866_s25 = sshll.u32 %s1169_s24, 4  ;;  %s867_s25 = int_to_ptr.vmem [resolvable:$true] %s866_s25 }
  0x38   :  { %940 = vmatpush3.msra.mxu0 %v83_v1  ;;  %210 = vrot.lane.b32.xlu1 %v1231_v5, %s1164_s3  ;;  %v95_v11 = vld [vmem:[#allocation5 + $0x8] sm:$0xff]  ;;  %v884_v13 = vld [vmem:[%s1483_s4] ss:$0 sm:$0xff]  ;;  %vm457_vm2 = vcmp.ge.s32.totalorder %v1303_v43, 8  ;;  %vm458_vm3 = vcmp.lt.s32.totalorder %v1303_v43, 16  ;;  %vm460_vm4 = vcmp.ge.s32.totalorder %v1303_v43, 16  ;;  %p1133_p7 = scmp.lt.s32.totalorder %s867_s25, %s867_s25 }
  0x39   :  { %941 = vmatprep.subr.mxu0 %v81_v3  ;;  %951 = vmatprep.subr.mxu1 %v1165_v12  ;;  %v896_v45 = vld [vmem:[%s1481_s2 + $0x1] ss:$0 sm:$0xff]  ;;  %vm461_vm5 = vcmp.lt.s32.totalorder %v1303_v43, 24  ;;  %v895_v48 = vld [vmem:[%s1481_s2] ss:$0 sm:$0xff]  ;;  %vm455_vm6 = vcmp.lt.s32.totalorder %v1303_v43, 8  ;;  %vm1316_vm7 = vmand %vm457_vm2, %vm458_vm3 }
  0x3a   :  { %942 = vmatpush3.msra.mxu0 %v81_v3  ;;  %959 = vmatprep.mubr.msk.f32.mxu1 %vm1166_vm1, %v1165_v12  ;;  %vm1320_vm8 = vmand %vm460_vm4, %vm461_vm5  ;;  %vm463_vm9 = vcmp.ge.s32.totalorder %v1303_v43, 24  ;;  %vm464_vm10 = vcmp.lt.s32.totalorder %v1303_v43, 32  ;;  %s1167_s2 = smov 96   ;;  %v82_v43 = vld [vmem:[#allocation7 + $0x18] sm:$0xff]  ;;  %v80_v50 = vld [vmem:[#allocation7 + $0x8] sm:$0xff]  ;;  %s1128_s28 = scalar_lea.vmem %s867_s25, 256 }
  0x3b   :  { %943 = vmatprep.subr.mxu0 %v79_v6  ;;  %212 = vrot.lane.b32.xlu0 %v1235_v7, %s1164_s3  ;;  %vm1341_vm11 = vmand %vm463_vm9, %vm464_vm10  ;;  %p1129_p6 = scmp.ne.s32.totalorder %s867_s25, %s1128_s28  ;;  %p1134_p8 = scmp.lt.s32.totalorder %s1128_s28, %s1128_s28 }
  0x3c   :  { %944 = vmatpush3.msra.mxu0 %v79_v6  ;;  %208 = vrot.lane.b32.xlu1 %v1237_v8, %s1164_s3 }
  0x3d   :  { %946 = vmatmul.mubr.msk.f32.vlgmr.msra.gmra.mxu0 %vm96_vm0, %v93_v9  ;;  %962 = vmatprep.subr.mxu0 %v1165_v12  ;;  %p1135_p9 = por %p1134_p8, %p1133_p7 }
  0x3e   :  { %948 = vmatprep.mubr.msk.f32.mxu0 %vm96_vm0, %v94_v10 }
  0x3f   :  { %p1136_p10 = pnand %p1135_p9, %p1129_p6 }
  0x41   :  { %949 = vmatmul.mubr.msk.f32.gmra.mxu0 %vm96_vm0, %v95_v11 }
  0x42   :  { %970 = vmatprep.mubr.msk.f32.mxu0 %vm1166_vm1, %v1165_v12 }
  0xa9   :  { %v215_v16 = vpop.permute.xlu0 %214 }
  0xaa   :  { %v211_v26 = vpop.permute.xlu1 %210 }
  0xad   :  { %v213_v24 = vpop.permute.xlu0 %212 }
  0xae   :  { %v209_v30 = vpop.permute.xlu1 %208 }
  0xfd   :  { %v947_v14 = vpop.f32.mrf.mxu0 }
  0xfe   :  { %v1251_v15 = vadd.f32 %v947_v14, %v884_v13 }
  0xff   :  { %v175_v17 = vpop.f32.mrf.mxu0 }
 0x100   :  { %v1253_v18 = vadd.f32 %v884_v13, %v175_v17 }
 0x101   :  { %v950_v19 = vpop.f32.mrf.mxu0 }
 0x102   :  { %v1255_v20 = vadd.f32 %v950_v19, %v884_v13 }
 0x103   :  { %v185_v21 = vpop.f32.mrf.mxu0 }
 0x104   :  { %v1257_v22 = vadd.f32 %v884_v13, %v185_v21  ;;  %v227_v23 = vmul.f32 %v215_v16, %v1255_v20  ;;  %v226_v27 = vmul.f32 %v213_v24, %v1255_v20  ;;  %v225_v29 = vmul.f32 %v211_v26, %v1255_v20 }
 0x105   :  { %v224_v32 = vmul.f32 %v209_v30, %v1255_v20 }
 0x106   :  { %351 = vrot.lane.b32.xlu1 %v227_v23, %s1164_s3  ;;  %v223_v25 = vmul.f32 %v215_v16, %v1257_v22  ;;  %v222_v28 = vmul.f32 %v213_v24, %v1257_v22  ;;  %v221_v31 = vmul.f32 %v211_v26, %v1257_v22  ;;  %v220_v33 = vmul.f32 %v209_v30, %v1257_v22 }
 0x108   :  { %258 = vrot.lane.b32.xlu0 %v223_v25, %s1164_s3 }
 0x10a   :  { %349 = vrot.lane.b32.xlu1 %v226_v27, %s1164_s3 }
 0x10c   :  { %256 = vrot.lane.b32.xlu0 %v222_v28, %s1164_s3 }
 0x10e   :  { %347 = vrot.lane.b32.xlu1 %v225_v29, %s1164_s3 }
 0x110   :  { %254 = vrot.lane.b32.xlu0 %v221_v31, %s1164_s3 }
 0x112   :  { %345 = vrot.lane.b32.xlu1 %v224_v32, %s1164_s3 }
 0x114   :  { %252 = vrot.lane.b32.xlu0 %v220_v33, %s1164_s3 }
 0x178   :  { %v352_v34 = vpop.permute.xlu1 %351 }
 0x179   :  { %963 = vmatpush3.xpose.msk.msra.mxu0 %vm96_vm0, %v352_v34 }
 0x17a   :  { %v259_v35 = vpop.permute.xlu0 %258  ;;  %964 = vmatprep.subr.mxu0 %v1165_v12 }
 0x17b   :  { %952 = vmatpush3.xpose.msk.msra.mxu1 %vm96_vm0, %v259_v35 }
 0x17c   :  { %v350_v36 = vpop.permute.xlu1 %349  ;;  %953 = vmatprep.subr.mxu1 %v1165_v12 }
 0x17d   :  { %965 = vmatpush3.xpose.msk.msra.mxu0 %vm96_vm0, %v350_v36 }
 0x17e   :  { %v257_v37 = vpop.permute.xlu0 %256  ;;  %966 = vmatprep.subr.mxu0 %v1165_v12 }
 0x17f   :  { %954 = vmatpush3.xpose.msk.msra.mxu1 %vm96_vm0, %v257_v37 }
 0x180   :  { %v348_v38 = vpop.permute.xlu1 %347  ;;  %955 = vmatprep.subr.mxu1 %v1165_v12 }
 0x181   :  { %967 = vmatpush3.xpose.msk.msra.mxu0 %vm96_vm0, %v348_v38 }
 0x182   :  { %v255_v39 = vpop.permute.xlu0 %254  ;;  %968 = vmatprep.subr.mxu0 %v1165_v12 }
 0x183   :  { %956 = vmatpush3.xpose.msk.msra.mxu1 %vm96_vm0, %v255_v39 }
 0x184   :  { %v346_v40 = vpop.permute.xlu1 %345  ;;  %957 = vmatprep.subr.mxu1 %v1165_v12 }
 0x185   :  { %969 = vmatpush3.xpose.msk.msra.mxu0 %vm96_vm0, %v346_v40 }
 0x186   :  { %v253_v41 = vpop.permute.xlu0 %252  ;;  %984 = vmatprep.subr.mxu0 %v1165_v12 }
 0x187   :  { %958 = vmatpush3.xpose.msk.msra.mxu1 %vm96_vm0, %v253_v41 }
 0x188   :  { %971 = vmatmul.mubr.msk.f32.vlgmr.msra.gmra.mxu0 %vm96_vm0, %v1251_v15  ;;  %973 = vmatprep.subr.mxu1 %v1165_v12 }
 0x189   :  { %992 = vmatprep.mubr.msk.f32.mxu0 %vm1166_vm1, %v1165_v12 }
 0x18a   :  { %960 = vmatmul.mubr.msk.f32.vlgmr.msra.gmra.mxu1 %vm96_vm0, %v1253_v18 }
 0x18b   :  { %981 = vmatprep.mubr.msk.f32.mxu1 %vm1166_vm1, %v1165_v12 }
 0x248   :  { %v430_v44 = vpop.f32.mrf.mxu0 }
 0x249   :  { %v435_v46 = vmul.f32 0.35355338, %v430_v44 }
 0x24a   :  { %v337_v47 = vpop.f32.mrf.mxu1  ;;  %v972_v49 = vpop.f32.mrf.mxu0 }
 0x24b   :  { %v451_v51 = vadd.f32 %v896_v45, %v435_v46  ;;  %v434_v52 = vmul.f32 0.35355338, %v337_v47 }
 0x24c   :  { %v961_v53 = vpop.f32.mrf.mxu1 }
 0x24d   :  { %v1324_v55 = vadd.f32 %v895_v48, %v434_v52  ;;  %v467_v56 = vsel %vm455_vm6, %v451_v51, -inf  ;;  %v477_v57 = vsel %vm1316_vm7, %v451_v51, -inf  ;;  %v487_v60 = vsel %vm1320_vm8, %v451_v51, -inf }
 0x24e   :  { %v471_v58 = vsel %vm96_vm0, %v467_v56, -inf  ;;  %v481_v59 = vsel %vm96_vm0, %v477_v57, -inf  ;;  %v491_v62 = vsel %vm96_vm0, %v487_v60, -inf  ;;  %v497_v11 = vsel %vm1341_vm11, %v451_v51, -inf }
 0x24f   :  { %472 = vmax.xlane.f32.xlu1 %v471_v58  ;;  %482 = vmax.xlane.f32.xlu0 %v481_v59  ;;  %v486_v61 = vsel %vm1320_vm8, %v1324_v55, -inf  ;;  %v496_v1 = vsel %vm1341_vm11, %v1324_v55, -inf  ;;  %v466_v2 = vsel %vm455_vm6, %v1324_v55, -inf  ;;  %v476_v9 = vsel %vm1316_vm7, %v1324_v55, -inf }
 0x250   :  { %v488_v63 = vsel %vm96_vm0, %v486_v61, -inf  ;;  %v498_v3 = vsel %vm96_vm0, %v496_v1, -inf  ;;  %v468_v6 = vsel %vm96_vm0, %v466_v2, -inf  ;;  %v478_v10 = vsel %vm96_vm0, %v476_v9, -inf }
 0x251   :  { %v501_v13 = vsel %vm96_vm0, %v497_v11, -inf }
 0x253   :  { %492 = vmax.xlane.f32.xlu0 %v491_v62  ;;  %489 = vmax.xlane.f32.xlu1 %v488_v63 }
 0x257   :  { %499 = vmax.xlane.f32.xlu1 %v498_v3  ;;  %469 = vmax.xlane.f32.xlu0 %v468_v6 }
 0x25b   :  { %479 = vmax.xlane.f32.xlu0 %v478_v10 }
 0x25f   :  { %502 = vmax.xlane.f32.xlu0 %v501_v13 }
 0x268   :  { %234 = vrot.lane.b32.xlu1 %v1227_v4, %s1167_s2 }
 0x26c   :  { %230 = vrot.lane.b32.xlu1 %v1231_v5, %s1167_s2 }
 0x270   :  { %228 = vrot.lane.b32.xlu1 %v1237_v8, %s1167_s2 }
 0x275   :  { %232 = vrot.lane.b32.xlu0 %v1235_v7, %s1167_s2 }
 0x2d8   :  { %v473_v14 = vpop.xlane.xlu1 %472  ;;  %v483_v16 = vpop.xlane.xlu0 %482 }
 0x2d9   :  { %v475_v5 = vsel %vm455_vm6, %v473_v14, 0.0 }
 0x2da   :  { %v485_v27 = vsel %vm1316_vm7, %v483_v16, %v475_v5 }
 0x2dc   :  { %v490_v17 = vpop.xlane.xlu1 %489  ;;  %v493_v19 = vpop.xlane.xlu0 %492 }
 0x2dd   :  { %v495_v29 = vsel %vm1320_vm8, %v493_v19, %v485_v27 }
 0x2e0   :  { %v500_v21 = vpop.xlane.xlu1 %499  ;;  %v470_v23 = vpop.xlane.xlu0 %469 }
 0x2e1   :  { %v474_v34 = vsel %vm455_vm6, %v470_v23, 0.0  ;;  %v86_v23 = vld [vmem:[#allocation7 + $0x38] sm:$0xff] }
 0x2e4   :  { %v235_v24 = vpop.permute.xlu1 %234  ;;  %v480_v25 = vpop.xlane.xlu0 %479 }
 0x2e5   :  { %v243_v26 = vmul.f32 %v235_v24, %v1257_v22  ;;  %v247_v4 = vmul.f32 %v235_v24, %v1255_v20  ;;  %v484_v35 = vsel %vm1316_vm7, %v480_v25, %v474_v34 }
 0x2e6   :  { %v494_v38 = vsel %vm1320_vm8, %v490_v17, %v484_v35 }
 0x2e7   :  { %572 = vrot.lane.b32.xlu1 %v243_v26, %s1168_s23  ;;  %661 = vrot.lane.b32.xlu0 %v247_v4, %s1168_s23  ;;  %v504_v40 = vsel %vm1341_vm11, %v500_v21, %v494_v38 }
 0x2e8   :  { %v231_v7 = vpop.permute.xlu1 %230  ;;  %v503_v8 = vpop.xlane.xlu0 %502  ;;  %v506_v41 = vsub.f32 %v1324_v55, %v504_v40 }
 0x2e9   :  { %v241_v28 = vmul.f32 %v231_v7, %v1257_v22  ;;  %v505_v30 = vsel %vm1341_vm11, %v503_v8, %v495_v29  ;;  %v245_v39 = vmul.f32 %v231_v7, %v1255_v20 }
 0x2ea   :  { %v507_v33 = vsub.f32 %v451_v51, %v505_v30  ;;  %v508_v42 = vmul.f32 1.442695, %v506_v41  ;;  %v84_v41 = vld [vmem:[#allocation7 + $0x28] sm:$0xff] }
 0x2eb   :  { %568 = vrot.lane.b32.xlu0 %v241_v28, %s1168_s23 }
 0x2ec   :  { %v233_v31 = vpop.permute.xlu0 %232  ;;  %v510_v37 = vmul.f32 1.442695, %v507_v33  ;;  %v229_v1 = vpop.permute.xlu1 %228 }
 0x2ed   :  { %v242_v32 = vmul.f32 %v233_v31, %v1257_v22  ;;  %v246_v36 = vmul.f32 %v233_v31, %v1255_v20  ;;  %v240_v2 = vmul.f32 %v229_v1, %v1257_v22  ;;  %v244_v3 = vmul.f32 %v229_v1, %v1255_v20 }
 0x2ee   :  { %1020 = vpow2.f32 %v510_v37 }
 0x2ef   :  { %570 = vrot.lane.b32.xlu1 %v242_v32, %s1168_s23  ;;  %1022 = vpow2.f32 %v508_v42 }
 0x2f3   :  { %659 = vrot.lane.b32.xlu1 %v246_v36, %s1168_s23 }
 0x2f7   :  { %657 = vrot.lane.b32.xlu1 %v245_v39, %s1168_s23 }
 0x2fb   :  { %v1397_v44 = vpop.eup %1020 }
 0x2fc   :  { %v525_v45 = vsel %vm1316_vm7, %v1397_v44, 0.0  ;;  %v537_v47 = vsel %vm1320_vm8, %v1397_v44, 0.0  ;;  %v549_v49 = vsel %vm1341_vm11, %v1397_v44, 0.0  ;;  %v1410_v51 = vpop.eup %1022  ;;  %v513_v57 = vsel %vm455_vm6, %v1397_v44, 0.0 }
 0x2fd   :  { %v529_v46 = vsel %vm96_vm0, %v525_v45, 0.0  ;;  %v541_v48 = vsel %vm96_vm0, %v537_v47, 0.0  ;;  %v553_v52 = vsel %vm96_vm0, %v549_v49, 0.0  ;;  %v512_v53 = vsel %vm455_vm6, %v1410_v51, 0.0 }
 0x2fe   :  { %v514_v55 = vsel %vm96_vm0, %v512_v53, 0.0  ;;  %v524_v56 = vsel %vm1316_vm7, %v1410_v51, 0.0  ;;  %v517_v59 = vsel %vm96_vm0, %v513_v57, 0.0  ;;  %v536_v60 = vsel %vm1320_vm8, %v1410_v51, 0.0 }
 0x2ff   :  { %v526_v58 = vsel %vm96_vm0, %v524_v56, 0.0  ;;  %v538_v61 = vsel %vm96_vm0, %v536_v60, 0.0  ;;  %v548_v62 = vsel %vm1341_vm11, %v1410_v51, 0.0 }
 0x300   :  { %v550_v63 = vsel %vm96_vm0, %v548_v62, 0.0 }
 0x30a   :  { %530 = vadd.xlane.f32.xlu0 %v529_v46 }
 0x30e   :  { %542 = vadd.xlane.f32.xlu0 %v541_v48 }
 0x312   :  { %554 = vadd.xlane.f32.xlu0 %v553_v52 }
 0x316   :  { %515 = vadd.xlane.f32.xlu0 %v514_v55 }
 0x31a   :  { %527 = vadd.xlane.f32.xlu0 %v526_v58 }
 0x31b   :  { %518 = vadd.xlane.f32.xlu1 %v517_v59 }
 0x31f   :  { %539 = vadd.xlane.f32.xlu1 %v538_v61 }
 0x323   :  { %551 = vadd.xlane.f32.xlu1 %v550_v63 }
 0x330   :  { %566 = vrot.lane.b32.xlu0 %v240_v2, %s1168_s23 }
 0x334   :  { %655 = vrot.lane.b32.xlu1 %v244_v3, %s1168_s23 }
 0x359   :  { %v573_v6 = vpop.permute.xlu1 %572  ;;  %v662_v9 = vpop.permute.xlu0 %661 }
 0x35a   :  { %974 = vmatpush3.msra.mxu1 %v573_v6  ;;  %985 = vmatpush3.msra.mxu0 %v662_v9 }
 0x35b   :  { %975 = vmatprep.subr.mxu1 %v1165_v12  ;;  %986 = vmatprep.subr.mxu0 %v1165_v12 }
 0x35d   :  { %v569_v11 = vpop.permute.xlu0 %568 }
 0x361   :  { %v571_v10 = vpop.permute.xlu1 %570 }
 0x362   :  { %976 = vmatpush3.msra.mxu1 %v571_v10 }
 0x363   :  { %977 = vmatprep.subr.mxu1 %v1165_v12 }
 0x364   :  { %978 = vmatpush3.msra.mxu1 %v569_v11 }
 0x365   :  { %v660_v22 = vpop.permute.xlu1 %659  ;;  %979 = vmatprep.subr.mxu1 %v1165_v12 }
 0x366   :  { %987 = vmatpush3.msra.mxu0 %v660_v22 }
 0x367   :  { %988 = vmatprep.subr.mxu0 %v1165_v12 }
 0x369   :  { %v658_v20 = vpop.permute.xlu1 %657 }
 0x36a   :  { %989 = vmatpush3.msra.mxu0 %v658_v20 }
 0x36b   :  { %990 = vmatprep.subr.mxu0 %v1165_v12 }
 0x393   :  { %v531_v13 = vpop.xlane.xlu0 %530 }
 0x394   :  { %1024 = vrcp.f32 %v531_v13 }
 0x397   :  { %v543_v14 = vpop.xlane.xlu0 %542 }
 0x39b   :  { %v555_v16 = vpop.xlane.xlu0 %554 }
 0x39f   :  { %v516_v17 = vpop.xlane.xlu0 %515 }
 0x3a1   :  { %v1025_v4 = vpop.eup %1024 }
 0x3a3   :  { %v528_v19 = vpop.xlane.xlu0 %527 }
 0x3a4   :  { %v519_v21 = vpop.xlane.xlu1 %518 }
 0x3a5   :  { %1026 = vrcp.f32 %v519_v21 }
 0x3a6   :  { %1028 = vrcp.f32 %v543_v14 }
 0x3a7   :  { %1030 = vrcp.f32 %v555_v16  ;;  %v567_v24 = vpop.permute.xlu0 %566 }
 0x3a8   :  { %1032 = vrcp.f32 %v516_v17  ;;  %v540_v25 = vpop.xlane.xlu1 %539  ;;  %980 = vmatpush3.msra.mxu1 %v567_v24 }
 0x3a9   :  { %1034 = vrcp.f32 %v528_v19  ;;  %995 = vmatprep.subr.mxu1 %v86_v23 }
 0x3aa   :  { %1036 = vrcp.f32 %v540_v25 }
 0x3ac   :  { %v552_v26 = vpop.xlane.xlu1 %551 }
 0x3ad   :  { %1038 = vrcp.f32 %v552_v26 }
 0x3b0   :  { %v656_v12 = vpop.permute.xlu1 %655 }
 0x3b1   :  { %991 = vmatpush3.msra.mxu0 %v656_v12 }
 0x3b2   :  { %v1027_v5 = vpop.eup %1026 }
 0x3b3   :  { %v1029_v7 = vpop.eup %1028  ;;  %v523_v8 = vsel %vm455_vm6, %v1027_v5, 0.0 }
 0x3b4   :  { %v1031_v27 = vpop.eup %1030  ;;  %v535_v28 = vsel %vm1316_vm7, %v1025_v4, %v523_v8 }
 0x3b5   :  { %v1033_v29 = vpop.eup %1032  ;;  %v547_v30 = vsel %vm1320_vm8, %v1029_v7, %v535_v28 }
 0x3b6   :  { %v1035_v31 = vpop.eup %1034  ;;  %v559_v32 = vsel %vm1341_vm11, %v1031_v27, %v547_v30  ;;  %v522_v35 = vsel %vm455_vm6, %v1033_v29, 0.0 }
 0x3b7   :  { %v1037_v33 = vpop.eup %1036  ;;  %v561_v34 = vmul.f32 %v1397_v44, %v559_v32  ;;  %v534_v36 = vsel %vm1316_vm7, %v1035_v31, %v522_v35 }
 0x3b8   :  { %v546_v38 = vsel %vm1320_vm8, %v1037_v33, %v534_v36 }
 0x3b9   :  { %993 = vmatmul.mubr.msk.f32.vlgmr.msra.gmra.mxu0 %vm96_vm0, %v561_v34 }
 0x3ba   :  { %v1039_v37 = vpop.eup %1038 }
 0x3bb   :  { %v558_v39 = vsel %vm1341_vm11, %v1039_v37, %v546_v38 }
 0x3bc   :  { %v560_v40 = vmul.f32 %v1410_v51, %v558_v39 }
 0x3be   :  { %982 = vmatmul.mubr.msk.f32.vlgmr.msra.gmra.mxu1 %vm96_vm0, %v560_v40 }
 0x3bf   :  { %996 = vmatpush3.msra.mxu1 %v86_v23 }
 0x3c0   :  { %997 = vmatprep.subr.mxu1 %v84_v41 }
 0x3c1   :  { %998 = vmatpush3.msra.mxu1 %v84_v41 }
 0x3c2   :  { %999 = vmatprep.subr.mxu1 %v82_v43 }
 0x3c3   :  { %1000 = vmatpush3.msra.mxu1 %v82_v43 }
 0x3c4   :  { %1001 = vmatprep.subr.mxu1 %v80_v50 }
 0x3c5   :  { %1002 = vmatpush3.msra.mxu1 %v80_v50 }
 0x479   :  { %v736_v42 = vpop.f32.mrf.mxu0 }
 0x47b   :  { %v994_v54 = vpop.f32.mrf.mxu0 }
 0x47e   :  { %v647_v44 = vpop.f32.mrf.mxu1 }
 0x47f   :  { %1003 = vmatprep.mubr.msk.f32.mxu1 %vm96_vm0, %v647_v44 }
 0x480   :  { %v983_v0 = vpop.f32.mrf.mxu1  ;;  %1004 = vmatmul.mubr.msk.f32.vlgmr.msra.gmra.mxu1 %vm96_vm0, %v736_v42 }
 0x540   :  { %v1005_v45 = vpop.f32.mrf.mxu1 }
 0x541   :  { %825 = vrot.lane.b32.xlu1 %v1005_v45, %s1168_s23 }
 0x542   :  { %v812_v46 = vpop.f32.mrf.mxu1 }
 0x543   :  { %823 = vrot.lane.b32.xlu0 %v812_v46, %s1168_s23 }
 0x5b3   :  { %v826_v47 = vpop.permute.xlu1 %825 }
 0x5b4   :  { %v830_v48 = vadd.f32 %v826_v47, %v1251_v15 }
 0x5b5   :  { %v824_v49 = vpop.permute.xlu0 %823 }
 0x5b6   :  { %v902_v51 = vclamps-f32 %v830_v48, 30.0  ;;  %v829_v52 = vadd.f32 %v824_v49, %v1253_v18 }
 0x5b8   :  { %v836_v53 = vsub.f32 0.0, %v902_v51  ;;  %v901_v55 = vclamps-f32 %v829_v52, 30.0 }
 0x5ba   :  { %v839_v56 = vmul.f32 1.442695, %v836_v53  ;;  %v835_v57 = vsub.f32 0.0, %v901_v55 }
 0x5bc   :  { %1040 = vpow2.f32 %v839_v56  ;;  %v837_v58 = vmul.f32 1.442695, %v835_v57 }
 0x5be   :  { %1042 = vpow2.f32 %v837_v58 }
 0x5c9   :  { %v1041_v59 = vpop.eup %1040 }
 0x5ca   :  { %v844_v60 = vmul.f32 %v1041_v59, %v1041_v59  ;;  %v842_v15 = vsub.f32 1.0, %v1041_v59 }
 0x5cb   :  { %v1043_v61 = vpop.eup %1042 }
 0x5cc   :  { %v846_v62 = vadd.f32 1.0, %v844_v60  ;;  %v843_v63 = vmul.f32 %v1043_v61, %v1043_v61  ;;  %v841_v6 = vsub.f32 1.0, %v1043_v61 }
 0x5ce   :  { %1044 = vrcp.f32 %v846_v62  ;;  %v845_v1 = vadd.f32 1.0, %v843_v63 }
 0x5d0   :  { %1046 = vrcp.f32 %v845_v1 }
 0x5db   :  { %v1045_v2 = vpop.eup %1044 }
 0x5dc   :  { %v850_v3 = vmul.f32 %v1045_v2, %v842_v15 }
 0x5dd   :  { %v1047_v18 = vpop.eup %1046 }
 0x5de   :  { %855 = vrot.lane.b32.xlu1 %v850_v3, %s1167_s2  ;;  %v849_v9 = vmul.f32 %v1047_v18, %v841_v6 }
 0x5e0   :  { %853 = vrot.lane.b32.xlu0 %v849_v9, %s1167_s2 }
 0x650   :  { %v856_v10 = vpop.permute.xlu1 %855 }
 0x651   :  { %860 = vst.msk [vmem:[#allocation10 + $0x8] sm:$0xff] %vm96_vm0, %v856_v10 }
 0x652   :  { %v854_v11 = vpop.permute.xlu0 %853 }
 0x653   :  { %859 = vst.msk [vmem:[#allocation10] sm:$0xff] %vm96_vm0, %v854_v11 }
 0x654   :  { %1139 = shalt.err (!%p1136_p10)
}
 0x655   :  { %872 = dma.vmem_to_hbm [thread:$0]  %s867_s25, 256, %s1485_s6, [#allocation4], %s1158_s26, %s1158_s26, %s1159_s27  }
 0x656   :  { %1154 = dma.done.wait [#allocation4], 256  }
 0x657   :  { %1155 = vsyncadd [#allocation4], 4294967040 }
 0x658   :  { %876 = vsyncpa [#allocation3], 1 }
 0x659   :  { %877 = vsyncpa [#allocation6], 1 }
 0x65a   :  { %878 = vsyncpa [#allocation9], 1 }
 0x65b   :  { %879 = vsyncpa [#allocation4], 1 }

</bundles_post_ra>
